<compile_context>
chip_gen: v7x
topology: tpu7x:2x2x1
jax: 0.10.0
libtpu: 0.0.40
codegen_flags: <defaults>
</compile_context>

<pallas_src>
import jax
import jax.numpy as jnp
from jax.experimental import pallas as pl
from jax.experimental.pallas import tpu as pltpu


def _gru_chunk_kernel(toks_ref,   # SMEM (T_pad,) int32 -- scalar-prefetched token ids
                      emb_ref,    # VMEM (V, H)          -- full embedding table (resident)
                      h0_ref,     # VMEM (1, H) f32      -- initial hidden state
                      w_ref,      # VMEM (2H, 4H)        -- fused weights [r | z | n_ih | n_hh]
                      b_ref,      # VMEM (1, 4H) f32     -- fused biases
                      out_ref,    # VMEM (chunk, H) f32  -- hidden state after every step
                      h_acc):     # VMEM scratch (1, H) f32 -- hidden carried across chunks
    c = pl.program_id(0)
    H = h0_ref.shape[-1]
    chunk = out_ref.shape[0]

    @pl.when(c == 0)
    def _():
        h_acc[...] = h0_ref[...].astype(jnp.float32)

    b = b_ref[...]                                     # (1, 4H), tiny; hoisted out of loop

    def step(t, h):
        tok = toks_ref[c * chunk + t]                  # scalar read from SMEM
        x = emb_ref[pl.ds(tok, 1), :].astype(jnp.float32)        # (1, H) embedded token
        xh = jnp.concatenate([x, h], axis=-1).astype(w_ref.dtype)  # (1, 2H)
        # Single fused MXU product; columns ordered [r | z | n_ih | n_hh].
        g = jnp.dot(xh, w_ref[...], preferred_element_type=jnp.float32) + b
        r = jax.nn.sigmoid(g[:, 0:H])
        z = jax.nn.sigmoid(g[:, H:2 * H])
        n = jnp.tanh(g[:, 2 * H:3 * H] + r * g[:, 3 * H:4 * H])
        h_new = (1.0 - z) * n + z * h                  # f32 throughout
        out_ref[pl.ds(t, 1), :] = h_new.astype(out_ref.dtype)
        return h_new

    h_acc[...] = jax.lax.fori_loop(0, chunk, step, h_acc[...])


def _encoder_gru_seq(tokens, h0, kparams, *, max_chunk=128):
    """tokens: (T,) int32 (already clamped), h0: (1, H) f32 -> (T, H) per-step hidden."""
    emb = kparams["emb"]            # (V, H)
    w_fused = kparams["w_fused"]    # (2H, 4H)
    b_fused = kparams["b_fused"]    # (1, 4H)
    V, H = emb.shape
    T = int(tokens.shape[0])

    if T <= max_chunk:
        chunk, n_chunks, t_pad = T, 1, T
    else:
        chunk = max_chunk
        n_chunks = -(-T // chunk)
        t_pad = n_chunks * chunk

    toks = tokens if t_pad == T else jnp.pad(tokens, (0, t_pad - T))

    grid_spec = pltpu.PrefetchScalarGridSpec(
        num_scalar_prefetch=1,
        grid=(n_chunks,),
        in_specs=[
            # Constant index_maps: fetched once, resident across all chunks.
            pl.BlockSpec((V, H), lambda c, toks: (0, 0)),
            pl.BlockSpec((1, H), lambda c, toks: (0, 0)),
            pl.BlockSpec((2 * H, 4 * H), lambda c, toks: (0, 0)),
            pl.BlockSpec((1, 4 * H), lambda c, toks: (0, 0)),
        ],
        # One lane-dense (chunk, H) output tile per grid step.
        out_specs=pl.BlockSpec((chunk, H), lambda c, toks: (c, 0)),
        scratch_shapes=[pltpu.VMEM((1, H), jnp.float32)],
    )

    outs = pl.pallas_call(
        _gru_chunk_kernel,
        out_shape=jax.ShapeDtypeStruct((t_pad, H), jnp.float32),
        grid_spec=grid_spec,
        compiler_params=pltpu.CompilerParams(
            dimension_semantics=("arbitrary",)),   # chunks carry the hidden state
    )(toks, emb, h0, w_fused, b_fused)
    return outs[:T]


def encoder_rnn_forward(token_id, hidden, kparams):
    """Single-step forward, matching EncoderRNN.forward.

    token_id: int scalar; hidden: (1, 1, H). Returns (output, hidden), both (1, 1, H).
    NOTE: for decode loops, prefer encoder_rnn_forward_seq (amortizes launch + weight DMA).
    """
    V, H = kparams["emb"].shape
    tok = jnp.clip(jnp.asarray(token_id, jnp.int32).reshape((1,)), 0, V - 1)
    h0 = hidden.reshape(1, H).astype(jnp.float32)
    outs = _encoder_gru_seq(tok, h0, kparams)          # (1, H)
    h_new = outs.reshape(1, 1, H)
    return h_new, h_new                                # output == hidden for a 1-step GRU


def encoder_rnn_forward_seq(tokens, hidden, kparams):
    """Whole-sequence encoder (how EncoderRNN is used in the training loop).

    tokens: (T,) int32; hidden: (1, 1, H). Returns (outputs (T,1,H), final hidden (1,1,H)).
    """
    V, H = kparams["emb"].shape
    toks = jnp.clip(jnp.asarray(tokens, jnp.int32).reshape(-1), 0, V - 1)
    h0 = hidden.reshape(1, H).astype(jnp.float32)
    outs = _encoder_gru_seq(toks, h0, kparams)         # (T, H)
    return outs.reshape(-1, 1, H), outs[-1].reshape(1, 1, H)


def prepare_kernel_params(params, *, weight_dtype=jnp.float32):
    """Convert PyTorch-layout params into the fused kernel layout.

    weight_dtype=jnp.bfloat16 halves weight DMA / VMEM and doubles MXU
    throughput on v6e/v7x; the recurrence math itself stays f32.
    """
    emb = params["emb"]                                # (V, H)
    w_ih, w_hh = params["w_ih"], params["w_hh"]        # (3H, H) each, rows [r; z; n]
    b_ih, b_hh = params["b_ih"], params["b_hh"]        # (3H,) each
    V, H = emb.shape

    w_ir, w_iz, w_in = w_ih[0:H], w_ih[H:2 * H], w_ih[2 * H:3 * H]
    w_hr, w_hz, w_hn = w_hh[0:H], w_hh[H:2 * H], w_hh[2 * H:3 * H]
    zeros = jnp.zeros((H, H), jnp.float32)
    # xh = [x | h] (1, 2H);  xh @ w_fused -> [r_pre | z_pre | (W_in x) | (W_hn h)]
    top = jnp.concatenate([w_ir.T, w_iz.T, w_in.T, zeros], axis=1)   # x rows
    bot = jnp.concatenate([w_hr.T, w_hz.T, zeros, w_hn.T], axis=1)   # h rows
    w_fused = jnp.concatenate([top, bot], axis=0).astype(weight_dtype)  # (2H, 4H)

    b_fused = jnp.concatenate([
        b_ih[0:H] + b_hh[0:H],            # r
        b_ih[H:2 * H] + b_hh[H:2 * H],    # z
        b_ih[2 * H:3 * H],                # n (input part)
        b_hh[2 * H:3 * H],                # n (hidden part, inside r * (...))
    ]).reshape(1, 4 * H).astype(jnp.float32)

    return {"emb": emb.astype(jnp.float32), "w_fused": w_fused, "b_fused": b_fused}


def init_params(key, input_size, hidden_size):
    """Synthetic parameters in PyTorch layout (nn.Embedding + nn.GRU, gate order r,z,n)."""
    ks = jax.random.split(key, 5)
    k = 1.0 / jnp.sqrt(hidden_size)
    emb = jax.random.normal(ks[0], (input_size, hidden_size), jnp.float32)
    w_ih = jax.random.uniform(ks[1], (3 * hidden_size, hidden_size), jnp.float32, -k, k)
    w_hh = jax.random.uniform(ks[2], (3 * hidden_size, hidden_size), jnp.float32, -k, k)
    b_ih = jax.random.uniform(ks[3], (3 * hidden_size,), jnp.float32, -k, k)
    b_hh = jax.random.uniform(ks[4], (3 * hidden_size,), jnp.float32, -k, k)
    return {"emb": emb, "w_ih": w_ih, "w_hh": w_hh, "b_ih": b_ih, "b_hh": b_hh}


def _reference_step(x, h, params):
    """Pure-JAX single GRU step in PyTorch convention (x, h: (1, H))."""
    wih, whh, bih, bhh = params["w_ih"], params["w_hh"], params["b_ih"], params["b_hh"]
    H = h.shape[-1]
    gi = x @ wih.T + bih
    gh = h @ whh.T + bhh
    r = jax.nn.sigmoid(gi[:, 0:H] + gh[:, 0:H])
    z = jax.nn.sigmoid(gi[:, H:2 * H] + gh[:, H:2 * H])
    n = jnp.tanh(gi[:, 2 * H:3 * H] + r * gh[:, 2 * H:3 * H])
    return (1.0 - z) * n + z * h


def _reference_forward_seq(tokens, hidden, params):
    """Pure-JAX reference: embedding lookup + GRU over the token sequence."""
    emb = params["emb"]
    H = emb.shape[1]
    h = hidden.reshape(1, H)
    outs = []
    for t in range(tokens.shape[0]):
        x = emb[tokens[t]].reshape(1, H)
        h = _reference_step(x, h, params)
        outs.append(h)
    return jnp.stack(outs, axis=0), h.reshape(1, 1, H)   # (T, 1, H), (1, 1, H)


if __name__ == "__main__":
    INPUT_SIZE = 16      # vocab size
    HIDDEN = 128         # hidden_size (multiple of 128 -> lane-dense vregs/stores)
    SEQ_LEN = 8

    key = jax.random.PRNGKey(0)
    pkey, hkey, tkey = jax.random.split(key, 3)
    params = init_params(pkey, INPUT_SIZE, HIDDEN)
    kparams = prepare_kernel_params(params)

    hidden0 = jax.random.normal(hkey, (1, 1, HIDDEN), jnp.float32)
    tokens = jax.random.randint(tkey, (SEQ_LEN,), 0, INPUT_SIZE, jnp.int32)

    ref_outs, ref_hid = _reference_forward_seq(tokens, hidden0, params)

    # --- single-step forward (exact EncoderRNN.forward semantics) ---
    out1, hid1 = encoder_rnn_forward(tokens[0], hidden0, kparams)
    out1 = jax.block_until_ready(out1)
    hid1 = jax.block_until_ready(hid1)
    assert out1.shape == (1, 1, HIDDEN) and hid1.shape == (1, 1, HIDDEN)
    assert jnp.allclose(out1, ref_outs[0].reshape(1, 1, HIDDEN), atol=1e-4, rtol=1e-4)
    assert jnp.allclose(hid1, ref_outs[0].reshape(1, 1, HIDDEN), atol=1e-4, rtol=1e-4)

    # --- full-sequence encoder (weights/embedding loaded once, in-kernel time loop) ---
    outs, hid = encoder_rnn_forward_seq(tokens, hidden0, kparams)
    outs = jax.block_until_ready(outs)
    hid = jax.block_until_ready(hid)
    assert outs.shape == (SEQ_LEN, 1, HIDDEN) and hid.shape == (1, 1, HIDDEN)
    assert jnp.allclose(outs, ref_outs, atol=1e-4, rtol=1e-4)
    assert jnp.allclose(hid, ref_hid, atol=1e-4, rtol=1e-4)

    # --- bf16-weight variant (halves weight DMA, ~2x MXU throughput on v6e/v7x) ---
    kparams_bf16 = prepare_kernel_params(params, weight_dtype=jnp.bfloat16)
    outs_bf16, hid_bf16 = encoder_rnn_forward_seq(tokens, hidden0, kparams_bf16)
    outs_bf16 = jax.block_until_ready(outs_bf16)
    hid_bf16 = jax.block_until_ready(hid_bf16)
    assert jnp.allclose(outs_bf16, ref_outs, atol=5e-2)
    assert jnp.allclose(hid_bf16, ref_hid, atol=5e-2)

    print("KERNEL_OK")
</pallas_src>

<mosaic_0001>
module attributes {stable_mosaic.version = 11 : i64} {
  func.func @_gru_chunk_kernel(%arg0: i32, %arg1: memref<1xi32, #tpu.memory_space<smem>>, %arg2: memref<16x128xf32, #tpu.memory_space<vmem>>, %arg3: memref<1x128xf32, #tpu.memory_space<vmem>>, %arg4: memref<256x512xf32, #tpu.memory_space<vmem>>, %arg5: memref<1x512xf32, #tpu.memory_space<vmem>>, %arg6: memref<1x128xf32, #tpu.memory_space<vmem>>, %arg7: memref<1x128xf32, #tpu.memory_space<vmem>>) attributes {dimension_semantics = [#tpu.dimension_semantics<arbitrary>], iteration_bounds = array<i64: 1>, scalar_prefetch = 1 : i64, scratch_operands = 1 : i64, tpu.core_type = #tpu.core_type<tc>, window_params = [{pipeline_mode = #tpu.pipeline_mode<synchronous>, transform_indices = @transform_0, window_bounds = array<i64: 16, 128>}, {pipeline_mode = #tpu.pipeline_mode<synchronous>, transform_indices = @transform_1, window_bounds = array<i64: 1, 128>}, {pipeline_mode = #tpu.pipeline_mode<synchronous>, transform_indices = @transform_2, window_bounds = array<i64: 256, 512>}, {pipeline_mode = #tpu.pipeline_mode<synchronous>, transform_indices = @transform_3, window_bounds = array<i64: 1, 512>}, {transform_indices = @transform_4, window_bounds = array<i64: 1, 128>}]} {
    %c0_i32 = arith.constant 0 : i32
    %0 = arith.cmpi eq, %arg0, %c0_i32 : i32
    %1 = arith.extui %0 : i1 to i32
    %c0_i32_0 = arith.constant 0 : i32
    %2 = arith.cmpi ne, %1, %c0_i32_0 : i32
    scf.if %2 {
      %c0_15 = arith.constant 0 : index
      %c0_16 = arith.constant 0 : index
      %40 = vector.load %arg3[%c0_15, %c0_16] : memref<1x128xf32, #tpu.memory_space<vmem>>, vector<1x128xf32>
      %c0_17 = arith.constant 0 : index
      %c0_18 = arith.constant 0 : index
      %41 = vector.load %arg7[%c0_17, %c0_18] : memref<1x128xf32, #tpu.memory_space<vmem>>, vector<1x128xf32>
      tpu.vector_store %arg7[%c0_17, %c0_18], %40 {strides = array<i32>} : memref<1x128xf32, #tpu.memory_space<vmem>>, vector<1x128xf32>,
    } else {
    }
    %c0 = arith.constant 0 : index
    %c0_1 = arith.constant 0 : index
    %3 = vector.load %arg5[%c0, %c0_1] : memref<1x512xf32, #tpu.memory_space<vmem>>, vector<1x512xf32>
    %c0_2 = arith.constant 0 : index
    %c0_3 = arith.constant 0 : index
    %4 = vector.load %arg7[%c0_2, %c0_3] : memref<1x128xf32, #tpu.memory_space<vmem>>, vector<1x128xf32>
    %c0_i32_4 = arith.constant 0 : i32
    %c1_i32 = arith.constant 1 : i32
    %5 = arith.muli %arg0, %c1_i32 : i32
    %6 = arith.addi %5, %c0_i32_4 : i32
    %7 = arith.index_cast %6 : i32 to index
    %8 = memref.load %arg1[%7] : memref<1xi32, #tpu.memory_space<smem>>
    %9 = arith.index_cast %8 : i32 to index
    %c0_5 = arith.constant 0 : index
    %10 = vector.load %arg2[%9, %c0_5] : memref<16x128xf32, #tpu.memory_space<vmem>>, vector<1x128xf32>
    %11 = tpu.concatenate %10, %4 in 1 : vector<1x128xf32>, vector<1x128xf32> -> vector<1x256xf32>
    %c0_6 = arith.constant 0 : index
    %c0_7 = arith.constant 0 : index
    %12 = vector.load %arg4[%c0_6, %c0_7] : memref<256x512xf32, #tpu.memory_space<vmem>>, vector<256x512xf32>
    %cst = arith.constant dense<0.000000e+00> : vector<1x512xf32>
    %13 = tpu.matmul %11, %12, %cst {dimension_numbers = #tpu.dot_dimension_numbers<[1], [0], [0], [1], [0, 0, 1, 1], [], []>} : vector<1x256xf32>, vector<256x512xf32>, vector<1x512xf32> -> vector<1x512xf32>
    %14 = arith.addf %13, %3 : vector<1x512xf32>
    %15 = vector.extract_strided_slice %14 {offsets = [0, 0], sizes = [1, 128], strides = [1, 1]} : vector<1x512xf32> to vector<1x128xf32>
    %16 = arith.negf %15 : vector<1x128xf32>
    %17 = math.exp %16 : vector<1x128xf32>
    %cst_8 = arith.constant 1.000000e+00 : f32
    %18 = vector.broadcast %cst_8 : f32 to vector<1x128xf32>
    %19 = arith.addf %18, %17 : vector<1x128xf32>
    %20 = arith.divf %18, %19 : vector<1x128xf32>
    %21 = vector.extract_strided_slice %14 {offsets = [0, 128], sizes = [1, 128], strides = [1, 1]} : vector<1x512xf32> to vector<1x128xf32>
    %22 = arith.negf %21 : vector<1x128xf32>
    %23 = math.exp %22 : vector<1x128xf32>
    %cst_9 = arith.constant 1.000000e+00 : f32
    %24 = vector.broadcast %cst_9 : f32 to vector<1x128xf32>
    %25 = arith.addf %24, %23 : vector<1x128xf32>
    %26 = arith.divf %24, %25 : vector<1x128xf32>
    %27 = vector.extract_strided_slice %14 {offsets = [0, 256], sizes = [1, 128], strides = [1, 1]} : vector<1x512xf32> to vector<1x128xf32>
    %28 = vector.extract_strided_slice %14 {offsets = [0, 384], sizes = [1, 128], strides = [1, 1]} : vector<1x512xf32> to vector<1x128xf32>
    %29 = arith.mulf %20, %28 : vector<1x128xf32>
    %30 = arith.addf %27, %29 : vector<1x128xf32>
    %31 = math.tanh %30 : vector<1x128xf32>
    %cst_10 = arith.constant 1.000000e+00 : f32
    %32 = vector.broadcast %cst_10 : f32 to vector<1x128xf32>
    %33 = arith.subf %32, %26 : vector<1x128xf32>
    %34 = arith.mulf %33, %31 : vector<1x128xf32>
    %35 = arith.mulf %26, %4 : vector<1x128xf32>
    %36 = arith.addf %34, %35 : vector<1x128xf32>
    %37 = arith.index_cast %c0_i32_4 : i32 to index
    %c0_11 = arith.constant 0 : index
    %38 = vector.load %arg6[%37, %c0_11] : memref<1x128xf32, #tpu.memory_space<vmem>>, vector<1x128xf32>
    tpu.vector_store %arg6[%37, %c0_11], %36 {strides = array<i32>} : memref<1x128xf32, #tpu.memory_space<vmem>>, vector<1x128xf32>,
    %c1_i32_12 = arith.constant 1 : i32
    %c0_13 = arith.constant 0 : index
    %c0_14 = arith.constant 0 : index
    %39 = vector.load %arg7[%c0_13, %c0_14] : memref<1x128xf32, #tpu.memory_space<vmem>>, vector<1x128xf32>
    tpu.vector_store %arg7[%c0_13, %c0_14], %36 {strides = array<i32>} : memref<1x128xf32, #tpu.memory_space<vmem>>, vector<1x128xf32>,
    return
  }
  func.func @transform_0(%arg0: i32, %arg1: memref<1xi32, #tpu.memory_space<smem>>) -> (i32, i32) {
    %c0_i32 = arith.constant 0 : i32
    %c0_i32_0 = arith.constant 0 : i32
    %c0_i32_1 = arith.constant 0 : i32
    return %c0_i32, %c0_i32_0 : i32, i32
  }
  func.func @transform_1(%arg0: i32, %arg1: memref<1xi32, #tpu.memory_space<smem>>) -> (i32, i32) {
    %c0_i32 = arith.constant 0 : i32
    %c0_i32_0 = arith.constant 0 : i32
    %c0_i32_1 = arith.constant 0 : i32
    return %c0_i32, %c0_i32_0 : i32, i32
  }
  func.func @transform_2(%arg0: i32, %arg1: memref<1xi32, #tpu.memory_space<smem>>) -> (i32, i32) {
    %c0_i32 = arith.constant 0 : i32
    %c0_i32_0 = arith.constant 0 : i32
    %c0_i32_1 = arith.constant 0 : i32
    return %c0_i32, %c0_i32_0 : i32, i32
  }
  func.func @transform_3(%arg0: i32, %arg1: memref<1xi32, #tpu.memory_space<smem>>) -> (i32, i32) {
    %c0_i32 = arith.constant 0 : i32
    %c0_i32_0 = arith.constant 0 : i32
    %c0_i32_1 = arith.constant 0 : i32
    return %c0_i32, %c0_i32_0 : i32, i32
  }
  func.func @transform_4(%arg0: i32, %arg1: memref<1xi32, #tpu.memory_space<smem>>) -> (i32, i32) {
    %c0_i32 = arith.constant 0 : i32
    %c0_i32_0 = arith.constant 0 : i32
    return %arg0, %c0_i32 : i32, i32
  }
}

</mosaic_0001>

<bundles_post_ra>
// kernel: tpu_custom_call.1
= control target key start
LH: loop header
LB: loop body
LE: loop exit
PB: predicated region body
PF: predicated region fallthrough
CT: control target
= control target key end

     0   :  { %11 = vsyncpa [#allocation6], 0  ;;  %s694_s0 = inlined_call_operand.<no memory space> [shape: s32[1], index: 0, kind: input, shape index: {}]   ;;  %s695_s1 = inlined_call_operand.hbm [shape: f32[16,128], index: 1, kind: input, shape index: {}]   ;;  %s696_s2 = inlined_call_operand.vmem [shape: f32[1,128], index: 2, kind: input, shape index: {}]   ;;  %s697_s3 = inlined_call_operand.hbm [shape: f32[256,512], index: 3, kind: input, shape index: {}]   ;;  %s698_s4 = inlined_call_operand.vmem [shape: f32[1,512], index: 4, kind: input, shape index: {}]   ;;  %s699_s5 = inlined_call_operand.hbm [shape: f32[1,128], index: 5, kind: output, shape index: {}]  }
   0x1   :  { %12 = vsyncpa [#allocation9], 0 }
   0x2   :  { %13 = vsyncpa [#allocation7], 0  ;;  %s607_s18 = smov [#allocation5]   ;;  %s535_s22 = scalar_lea.hbm %s695_s1, 256 }
   0x3   :  { %s19_s19 = sshll.u32 %s607_s18, 4  ;;  %p536_p0 = scmp.ne.s32.totalorder %s695_s1, %s535_s22  ;;  %s20_s19 = int_to_ptr.vmem [resolvable:$true] %s19_s19 }
   0x4   :  { %p539_p1 = scmp.lt.u32.totalorder %s535_s22, %s695_s1 }
   0x6   :  { %p541_p2 = pnand %p539_p1, %p536_p0 }
   0x8   :  { %544 = shalt.err (!%p541_p2)
}
   0x9   :  { %s545_s27 = scalar_lea.vmem %s20_s19, 256  ;;  %p550_p4 = scmp.lt.s32.totalorder %s20_s19, %s20_s19 }
   0xa   :  { %p546_p3 = scmp.ne.s32.totalorder %s20_s19, %s545_s27  ;;  %p551_p5 = scmp.lt.s32.totalorder %s545_s27, %s545_s27 }
   0xc   :  { %p552_p6 = por %p551_p5, %p550_p4 }
   0xe   :  { %p553_p7 = pnand %p552_p6, %p546_p3 }
  0x10   :  { %556 = shalt.err (!%p553_p7)
}
  0x11   :  { %s608_s28 = smov 128   ;;  %s609_s29 = smov 8  }
  0x12   :  { %25 = dma.hbm_to_vmem [thread:$0]  %s695_s1, 256, %s20_s19, [#allocation6], %s608_s28, %s608_s28, %s609_s29  }
  0x13   :  { %s610_s7 = smov [#allocation8]   ;;  %s557_s11 = scalar_lea.hbm %s697_s3, 16384 }
  0x14   :  { %s33_s8 = sshll.u32 %s610_s7, 4  ;;  %p558_p8 = scmp.ne.s32.totalorder %s697_s3, %s557_s11  ;;  %s34_s8 = int_to_ptr.vmem [resolvable:$true] %s33_s8 }
  0x15   :  { %p561_p9 = scmp.lt.u32.totalorder %s557_s11, %s697_s3 }
  0x17   :  { %p563_p10 = pnand %p561_p9, %p558_p8 }
  0x19   :  { %566 = shalt.err (!%p563_p10)
}
  0x1a   :  { %s567_s16 = scalar_lea.vmem %s34_s8, 16384  ;;  %p572_p12 = scmp.lt.s32.totalorder %s34_s8, %s34_s8 }
  0x1b   :  { %p568_p11 = scmp.ne.s32.totalorder %s34_s8, %s567_s16  ;;  %p573_p13 = scmp.lt.s32.totalorder %s567_s16, %s567_s16 }
  0x1d   :  { %p574_p0 = por %p573_p13, %p572_p12 }
  0x1f   :  { %p575_p1 = pnand %p574_p0, %p568_p11 }
  0x21   :  { %578 = shalt.err (!%p575_p1)
}
  0x22   :  { %s611_s1 = smov 512   ;;  %s612_s17 = smov 32  }
  0x23   :  { %39 = dma.hbm_to_vmem [thread:$0]  %s697_s3, 16384, %s34_s8, [#allocation9], %s611_s1, %s611_s1, %s612_s17  }
  0x24   :  { %601 = dma.done.wait [#allocation6], 256  }
  0x25   :  { %602 = vsyncadd [#allocation6], 4294967040 }
  0x26   :  { %603 = dma.done.wait [#allocation9], 16384  }
  0x27   :  { %604 = vsyncadd [#allocation9], 4294950912  ;;  %v60_v0 = vld [vmem:[#allocation8 + $0x8] sm:$0xff]  ;;  %v59_v2 = vld [vmem:[#allocation8] sm:$0xff]  ;;  %s57_s22 = scalar_lea.vmem [#allocation5], %s694_s0  ;;  %s613_s0 = smov [#allocation10]  }
  0x28   :  { %v64_v1 = vld [vmem:[#allocation8 + $0x28] sm:$0xff]  ;;  %v63_v4 = vld [vmem:[#allocation8 + $0x20] sm:$0xff]  ;;  %v62_v21 = vld [vmem:[#allocation8 + $0x18] sm:$0xff] }
  0x29   :  { %v390_v3 = vpack.c.bf16 %v64_v1, %v60_v0  ;;  %v68_v5 = vld [vmem:[#allocation8 + $0x48] sm:$0xff]  ;;  %v392_v7 = vpack.c.bf16 %v63_v4, %v59_v2  ;;  %v67_v9 = vld [vmem:[#allocation8 + $0x40] sm:$0xff]  ;;  %v66_v25 = vld [vmem:[#allocation8 + $0x38] sm:$0xff] }
  0x2a   :  { %v72_v6 = vld [vmem:[#allocation8 + $0x68] sm:$0xff]  ;;  %v71_v10 = vld [vmem:[#allocation8 + $0x60] sm:$0xff]  ;;  %v454_v27 = vpack.c.bf16 %v66_v25, %v62_v21  ;;  %v61_v28 = vld [vmem:[#allocation8 + $0x10] sm:$0xff] }
  0x2b   :  { %v394_v8 = vpack.c.bf16 %v72_v6, %v68_v5  ;;  %v76_v11 = vld [vmem:[#allocation8 + $0x88] sm:$0xff]  ;;  %391 = vmatprep.subr.bf16.mxu0 %v390_v3  ;;  %v396_v13 = vpack.c.bf16 %v71_v10, %v67_v9  ;;  %v75_v15 = vld [vmem:[#allocation8 + $0x80] sm:$0xff]  ;;  %v65_v29 = vld [vmem:[#allocation8 + $0x30] sm:$0xff] }
  0x2c   :  { %v80_v12 = vld [vmem:[#allocation8 + $0xa8] sm:$0xff]  ;;  %393 = vmatpush1.bf16.msra.mxu0 %v392_v7  ;;  %v79_v16 = vld [vmem:[#allocation8 + $0xa0] sm:$0xff]  ;;  %v456_v30 = vpack.c.bf16 %v65_v29, %v61_v28  ;;  %v70_v31 = vld [vmem:[#allocation8 + $0x58] sm:$0xff]  ;;  %455 = vmatprep.subr.bf16.mxu1 %v454_v27 }
  0x2d   :  { %395 = vmatprep.subr.bf16.mxu0 %v394_v8  ;;  %v398_v14 = vpack.c.bf16 %v80_v12, %v76_v11  ;;  %v84_v17 = vld [vmem:[#allocation8 + $0xc8] sm:$0xff]  ;;  %v400_v19 = vpack.c.bf16 %v79_v16, %v75_v15  ;;  %v83_v20 = vld [vmem:[#allocation8 + $0xc0] sm:$0xff]  ;;  %v74_v32 = vld [vmem:[#allocation8 + $0x78] sm:$0xff] }
  0x2e   :  { %v88_v18 = vld [vmem:[#allocation8 + $0xe8] sm:$0xff]  ;;  %v87_v23 = vld [vmem:[#allocation8 + $0xe0] sm:$0xff]  ;;  %v458_v35 = vpack.c.bf16 %v74_v32, %v70_v31  ;;  %v69_v36 = vld [vmem:[#allocation8 + $0x50] sm:$0xff]  ;;  %457 = vmatpush1.bf16.msra.mxu1 %v456_v30 }
  0x2f   :  { %v402_v22 = vpack.c.bf16 %v88_v18, %v84_v17  ;;  %v92_v24 = vld [vmem:[#allocation8 + $0x108] sm:$0xff]  ;;  %v404_v33 = vpack.c.bf16 %v87_v23, %v83_v20  ;;  %v91_v34 = vld [vmem:[#allocation8 + $0x100] sm:$0xff]  ;;  %v73_v40 = vld [vmem:[#allocation8 + $0x70] sm:$0xff] }
  0x30   :  { %397 = vmatpush1.bf16.msra.mxu0 %v396_v13  ;;  %v96_v26 = vld [vmem:[#allocation8 + $0x128] sm:$0xff]  ;;  %v95_v38 = vld [vmem:[#allocation8 + $0x120] sm:$0xff]  ;;  %459 = vmatprep.subr.bf16.mxu1 %v458_v35  ;;  %v460_v42 = vpack.c.bf16 %v73_v40, %v69_v36  ;;  %v78_v43 = vld [vmem:[#allocation8 + $0x98] sm:$0xff] }
  0x31   :  { %399 = vmatprep.subr.bf16.mxu0 %v398_v14  ;;  %v406_v37 = vpack.c.bf16 %v96_v26, %v92_v24  ;;  %v100_v39 = vld [vmem:[#allocation8 + $0x148] sm:$0xff]  ;;  %v82_v44 = vld [vmem:[#allocation8 + $0xb8] sm:$0xff]  ;;  %v77_v46 = vld [vmem:[#allocation8 + $0x90] sm:$0xff]  ;;  %v408_v48 = vpack.c.bf16 %v95_v38, %v91_v34 }
  0x32   :  { %v104_v41 = vld [vmem:[#allocation8 + $0x168] sm:$0xff]  ;;  %v462_v45 = vpack.c.bf16 %v82_v44, %v78_v43  ;;  %v81_v47 = vld [vmem:[#allocation8 + $0xb0] sm:$0xff]  ;;  %v99_v49 = vld [vmem:[#allocation8 + $0x140] sm:$0xff]  ;;  %461 = vmatpush1.bf16.msra.mxu1 %v460_v42 }
  0x33   :  { %v86_v50 = vld [vmem:[#allocation8 + $0xd8] sm:$0xff]  ;;  %v410_v51 = vpack.c.bf16 %v104_v41, %v100_v39  ;;  %v103_v52 = vld [vmem:[#allocation8 + $0x160] sm:$0xff]  ;;  %v108_v53 = vld [vmem:[#allocation8 + $0x188] sm:$0xff]  ;;  %v464_v54 = vpack.c.bf16 %v81_v47, %v77_v46 }
  0x34   :  { %401 = vmatpush1.bf16.msra.mxu0 %v400_v19  ;;  %v90_v55 = vld [vmem:[#allocation8 + $0xf8] sm:$0xff]  ;;  %v112_v56 = vld [vmem:[#allocation8 + $0x1a8] sm:$0xff]  ;;  %463 = vmatprep.subr.bf16.mxu1 %v462_v45  ;;  %v85_v58 = vld [vmem:[#allocation8 + $0xd0] sm:$0xff]  ;;  %v412_v62 = vpack.c.bf16 %v103_v52, %v99_v49 }
  0x35   :  { %403 = vmatprep.subr.bf16.mxu0 %v402_v22  ;;  %v466_v57 = vpack.c.bf16 %v90_v55, %v86_v50  ;;  %v89_v59 = vld [vmem:[#allocation8 + $0xf0] sm:$0xff]  ;;  %v94_v60 = vld [vmem:[#allocation8 + $0x118] sm:$0xff]  ;;  %v414_v63 = vpack.c.bf16 %v112_v56, %v108_v53  ;;  %v107_v0 = vld [vmem:[#allocation8 + $0x180] sm:$0xff] }
  0x36   :  { %v98_v61 = vld [vmem:[#allocation8 + $0x138] sm:$0xff]  ;;  %v111_v1 = vld [vmem:[#allocation8 + $0x1a0] sm:$0xff]  ;;  %v116_v2 = vld [vmem:[#allocation8 + $0x1c8] sm:$0xff]  ;;  %465 = vmatpush1.bf16.msra.mxu1 %v464_v54  ;;  %v468_v3 = vpack.c.bf16 %v89_v59, %v85_v58 }
  0x37   :  { %v120_v4 = vld [vmem:[#allocation8 + $0x1e8] sm:$0xff]  ;;  %467 = vmatprep.subr.bf16.mxu1 %v466_v57  ;;  %v470_v5 = vpack.c.bf16 %v98_v61, %v94_v60  ;;  %v93_v6 = vld [vmem:[#allocation8 + $0x110] sm:$0xff]  ;;  %v102_v8 = vld [vmem:[#allocation8 + $0x158] sm:$0xff]  ;;  %v416_v10 = vpack.c.bf16 %v111_v1, %v107_v0 }
  0x38   :  { %405 = vmatpush1.bf16.msra.mxu0 %v404_v33  ;;  %v97_v7 = vld [vmem:[#allocation8 + $0x130] sm:$0xff]  ;;  %v106_v9 = vld [vmem:[#allocation8 + $0x178] sm:$0xff]  ;;  %v418_v11 = vpack.c.bf16 %v120_v4, %v116_v2  ;;  %v115_v12 = vld [vmem:[#allocation8 + $0x1c0] sm:$0xff] }
  0x39   :  { %407 = vmatprep.subr.bf16.mxu0 %v406_v37  ;;  %v119_v13 = vld [vmem:[#allocation8 + $0x1e0] sm:$0xff]  ;;  %v124_v14 = vld [vmem:[#allocation8 + $0x208] sm:$0xff]  ;;  %v472_v15 = vpack.c.bf16 %v97_v7, %v93_v6  ;;  %v474_v17 = vpack.c.bf16 %v106_v9, %v102_v8  ;;  %v101_v18 = vld [vmem:[#allocation8 + $0x150] sm:$0xff] }
  0x3a   :  { %469 = vmatpush1.bf16.msra.mxu1 %v468_v3  ;;  %v128_v16 = vld [vmem:[#allocation8 + $0x228] sm:$0xff]  ;;  %v105_v19 = vld [vmem:[#allocation8 + $0x170] sm:$0xff]  ;;  %v110_v20 = vld [vmem:[#allocation8 + $0x198] sm:$0xff]  ;;  %v420_v22 = vpack.c.bf16 %v119_v13, %v115_v12 }
  0x3b   :  { %471 = vmatprep.subr.bf16.mxu1 %v470_v5  ;;  %v114_v21 = vld [vmem:[#allocation8 + $0x1b8] sm:$0xff]  ;;  %v422_v23 = vpack.c.bf16 %v128_v16, %v124_v14  ;;  %v123_v24 = vld [vmem:[#allocation8 + $0x200] sm:$0xff]  ;;  %v132_v26 = vld [vmem:[#allocation8 + $0x248] sm:$0xff]  ;;  %v476_v27 = vpack.c.bf16 %v105_v19, %v101_v18 }
  0x3c   :  { %409 = vmatpush1.bf16.msra.mxu0 %v408_v48  ;;  %v127_v25 = vld [vmem:[#allocation8 + $0x220] sm:$0xff]  ;;  %v136_v28 = vld [vmem:[#allocation8 + $0x268] sm:$0xff]  ;;  %v478_v29 = vpack.c.bf16 %v114_v21, %v110_v20  ;;  %v109_v30 = vld [vmem:[#allocation8 + $0x190] sm:$0xff] }
  0x3d   :  { %411 = vmatprep.subr.bf16.mxu0 %v410_v51  ;;  %v113_v31 = vld [vmem:[#allocation8 + $0x1b0] sm:$0xff]  ;;  %v118_v32 = vld [vmem:[#allocation8 + $0x1d8] sm:$0xff]  ;;  %v424_v34 = vpack.c.bf16 %v127_v25, %v123_v24  ;;  %v131_v35 = vld [vmem:[#allocation8 + $0x240] sm:$0xff]  ;;  %v426_v36 = vpack.c.bf16 %v136_v28, %v132_v26 }
  0x3e   :  { %473 = vmatpush1.bf16.msra.mxu1 %v472_v15  ;;  %v122_v33 = vld [vmem:[#allocation8 + $0x1f8] sm:$0xff]  ;;  %v135_v37 = vld [vmem:[#allocation8 + $0x260] sm:$0xff]  ;;  %v140_v38 = vld [vmem:[#allocation8 + $0x288] sm:$0xff]  ;;  %v480_v40 = vpack.c.bf16 %v113_v31, %v109_v30 }
  0x3f   :  { %475 = vmatprep.subr.bf16.mxu1 %v474_v17  ;;  %v144_v39 = vld [vmem:[#allocation8 + $0x2a8] sm:$0xff]  ;;  %v482_v41 = vpack.c.bf16 %v122_v33, %v118_v32  ;;  %v117_v42 = vld [vmem:[#allocation8 + $0x1d0] sm:$0xff]  ;;  %v126_v45 = vld [vmem:[#allocation8 + $0x218] sm:$0xff]  ;;  %v428_v47 = vpack.c.bf16 %v135_v37, %v131_v35 }
  0x40   :  { %413 = vmatpush1.bf16.msra.mxu0 %v412_v62  ;;  %v121_v43 = vld [vmem:[#allocation8 + $0x1f0] sm:$0xff]  ;;  %v52_v44 = vld [vmem:[%s696_s2] sm:$0x1]  ;;  %v130_v46 = vld [vmem:[#allocation8 + $0x238] sm:$0xff]  ;;  %v430_v48 = vpack.c.bf16 %v144_v39, %v140_v38 }
  0x41   :  { %415 = vmatprep.subr.bf16.mxu0 %v414_v63  ;;  %53 = vst [vmem:[#allocation2] sm:$0x1] %v52_v44  ;;  %v139_v49 = vld [vmem:[#allocation8 + $0x280] sm:$0xff]  ;;  %v148_v51 = vld [vmem:[#allocation8 + $0x2c8] sm:$0xff]  ;;  %v484_v52 = vpack.c.bf16 %v121_v43, %v117_v42  ;;  %v486_v54 = vpack.c.bf16 %v130_v46, %v126_v45  ;;  %v125_v55 = vld [vmem:[#allocation8 + $0x210] sm:$0xff] }
  0x42   :  { %477 = vmatpush1.bf16.msra.mxu1 %v476_v27  ;;  %v143_v50 = vld [vmem:[#allocation8 + $0x2a0] sm:$0xff]  ;;  %v152_v53 = vld [vmem:[#allocation8 + $0x2e8] sm:$0xff]  ;;  %v129_v56 = vld [vmem:[#allocation8 + $0x230] sm:$0xff] }
  0x43   :  { %479 = vmatprep.subr.bf16.mxu1 %v478_v29  ;;  %v134_v57 = vld [vmem:[#allocation8 + $0x258] sm:$0xff]  ;;  %v432_v59 = vpack.c.bf16 %v143_v50, %v139_v49  ;;  %v147_v60 = vld [vmem:[#allocation8 + $0x2c0] sm:$0xff]  ;;  %v434_v61 = vpack.c.bf16 %v152_v53, %v148_v51  ;;  %v156_v63 = vld [vmem:[#allocation8 + $0x308] sm:$0xff]  ;;  %v488_v1 = vpack.c.bf16 %v129_v56, %v125_v55 }
  0x44   :  { %417 = vmatpush1.bf16.msra.mxu0 %v416_v10  ;;  %v138_v58 = vld [vmem:[#allocation8 + $0x278] sm:$0xff]  ;;  %v151_v62 = vld [vmem:[#allocation8 + $0x2e0] sm:$0xff]  ;;  %v160_v0 = vld [vmem:[#allocation8 + $0x328] sm:$0xff] }
  0x45   :  { %419 = vmatprep.subr.bf16.mxu0 %v418_v11  ;;  %v490_v2 = vpack.c.bf16 %v138_v58, %v134_v57  ;;  %v133_v3 = vld [vmem:[#allocation8 + $0x250] sm:$0xff]  ;;  %v142_v6 = vld [vmem:[#allocation8 + $0x298] sm:$0xff]  ;;  %v436_v8 = vpack.c.bf16 %v151_v62, %v147_v60  ;;  %v438_v9 = vpack.c.bf16 %v160_v0, %v156_v63  ;;  %v155_v10 = vld [vmem:[#allocation8 + $0x300] sm:$0xff] }
  0x46   :  { %481 = vmatpush1.bf16.msra.mxu1 %v480_v40  ;;  %v137_v4 = vld [vmem:[#allocation8 + $0x270] sm:$0xff]  ;;  %v146_v7 = vld [vmem:[#allocation8 + $0x2b8] sm:$0xff]  ;;  %v159_v11 = vld [vmem:[#allocation8 + $0x320] sm:$0xff] }
  0x47   :  { %483 = vmatprep.subr.bf16.mxu1 %v482_v41  ;;  %v164_v12 = vld [vmem:[#allocation8 + $0x348] sm:$0xff]  ;;  %v492_v13 = vpack.c.bf16 %v137_v4, %v133_v3  ;;  %v494_v15 = vpack.c.bf16 %v146_v7, %v142_v6  ;;  %v141_v16 = vld [vmem:[#allocation8 + $0x290] sm:$0xff]  ;;  %v150_v18 = vld [vmem:[#allocation8 + $0x2d8] sm:$0xff]  ;;  %v440_v20 = vpack.c.bf16 %v159_v11, %v155_v10  ;;  %v188_v3 = vlaneseq }
  0x48   :  { %421 = vmatpush1.bf16.msra.mxu0 %v420_v22  ;;  %v671_v5 = vld [vmem:[#allocation2] sm:$0x1]  ;;  %v145_v17 = vld [vmem:[#allocation8 + $0x2b0] sm:$0xff]  ;;  %v154_v19 = vld [vmem:[#allocation8 + $0x2f8] sm:$0xff] }
  0x49   :  { %423 = vmatprep.subr.bf16.mxu0 %v422_v23  ;;  %272 = vmatprep.mubr.f32.mxu0 %v671_v5  ;;  %v168_v14 = vld [vmem:[#allocation8 + $0x368] sm:$0xff]  ;;  %v163_v22 = vld [vmem:[#allocation8 + $0x340] sm:$0xff]  ;;  %v496_v25 = vpack.c.bf16 %v145_v17, %v141_v16  ;;  %v498_v27 = vpack.c.bf16 %v154_v19, %v150_v18  ;;  %v149_v28 = vld [vmem:[#allocation8 + $0x2d0] sm:$0xff]  ;;  %v189_v4 = vshrl.u32 %v188_v3, 7 }
  0x4a   :  { %485 = vmatpush1.bf16.msra.mxu1 %v484_v52  ;;  %343 = vmatprep.mubr.f32.mxu1 %v671_v5  ;;  %v442_v21 = vpack.c.bf16 %v168_v14, %v164_v12  ;;  %v167_v23 = vld [vmem:[#allocation8 + $0x360] sm:$0xff]  ;;  %v172_v24 = vld [vmem:[#allocation8 + $0x388] sm:$0xff]  ;;  %v153_v29 = vld [vmem:[#allocation8 + $0x2f0] sm:$0xff] }
  0x4b   :  { %487 = vmatprep.subr.bf16.mxu1 %v486_v54  ;;  %v176_v26 = vld [vmem:[#allocation8 + $0x3a8] sm:$0xff]  ;;  %v158_v30 = vld [vmem:[#allocation8 + $0x318] sm:$0xff]  ;;  %v444_v32 = vpack.c.bf16 %v167_v23, %v163_v22  ;;  %v175_v35 = vld [vmem:[#allocation8 + $0x3a0] sm:$0xff]  ;;  %v500_v37 = vpack.c.bf16 %v153_v29, %v149_v28  ;;  %v190_v6 = vsub.s32 0, %v189_v4  ;;  %v198_v22 = vsub.s32 2, %v189_v4 }
  0x4c   :  { %425 = vmatpush1.bf16.msra.mxu0 %v424_v34  ;;  %v162_v31 = vld [vmem:[#allocation8 + $0x338] sm:$0xff]  ;;  %v446_v33 = vpack.c.bf16 %v176_v26, %v172_v24  ;;  %v171_v34 = vld [vmem:[#allocation8 + $0x380] sm:$0xff]  ;;  %v184_v38 = vld [vmem:[#allocation8 + $0x3e8] sm:$0xff] }
  0x4d   :  { %427 = vmatprep.subr.bf16.mxu0 %v426_v36  ;;  %v180_v36 = vld [vmem:[#allocation8 + $0x3c8] sm:$0xff]  ;;  %v502_v39 = vpack.c.bf16 %v162_v31, %v158_v30  ;;  %v157_v40 = vld [vmem:[#allocation8 + $0x310] sm:$0xff]  ;;  %v166_v42 = vld [vmem:[#allocation8 + $0x358] sm:$0xff]  ;;  %v448_v44 = vpack.c.bf16 %v175_v35, %v171_v34 }
  0x4e   :  { %489 = vmatpush1.bf16.msra.mxu1 %v488_v1  ;;  %v161_v41 = vld [vmem:[#allocation8 + $0x330] sm:$0xff]  ;;  %v170_v43 = vld [vmem:[#allocation8 + $0x378] sm:$0xff]  ;;  %v450_v45 = vpack.c.bf16 %v184_v38, %v180_v36  ;;  %v179_v46 = vld [vmem:[#allocation8 + $0x3c0] sm:$0xff] }
  0x4f   :  { %491 = vmatprep.subr.bf16.mxu1 %v490_v2  ;;  %v506_v49 = vpack.c.bf16 %v170_v43, %v166_v42  ;;  %v165_v50 = vld [vmem:[#allocation8 + $0x350] sm:$0xff]  ;;  %v174_v52 = vld [vmem:[#allocation8 + $0x398] sm:$0xff] }
  0x50   :  { %429 = vmatpush1.bf16.msra.mxu0 %v428_v47  ;;  %v183_v47 = vld [vmem:[#allocation8 + $0x3e0] sm:$0xff]  ;;  %v169_v51 = vld [vmem:[#allocation8 + $0x370] sm:$0xff]  ;;  %v178_v53 = vld [vmem:[#allocation8 + $0x3b8] sm:$0xff] }
  0x51   :  { %431 = vmatprep.subr.bf16.mxu0 %v430_v48  ;;  %v504_v48 = vpack.c.bf16 %v161_v41, %v157_v40  ;;  %v452_v54 = vpack.c.bf16 %v183_v47, %v179_v46  ;;  %v508_v55 = vpack.c.bf16 %v169_v51, %v165_v50  ;;  %v510_v56 = vpack.c.bf16 %v178_v53, %v174_v52  ;;  %v173_v57 = vld [vmem:[#allocation8 + $0x390] sm:$0xff]  ;;  %v186_v60 = vld [vmem:[#allocation8 + $0x3f8] sm:$0xff] }
  0x52   :  { %493 = vmatpush1.bf16.msra.mxu1 %v492_v13  ;;  %v177_v58 = vld [vmem:[#allocation8 + $0x3b0] sm:$0xff] }
  0x53   :  { %495 = vmatprep.subr.bf16.mxu1 %v494_v15  ;;  %v512_v62 = vpack.c.bf16 %v177_v58, %v173_v57  ;;  %v181_v0 = vld [vmem:[#allocation8 + $0x3d0] sm:$0xff] }
  0x54   :  { %433 = vmatpush1.bf16.msra.mxu0 %v432_v59  ;;  %v182_v59 = vld [vmem:[#allocation8 + $0x3d8] sm:$0xff]  ;;  %v185_v1 = vld [vmem:[#allocation8 + $0x3f0] sm:$0xff] }
  0x55   :  { %435 = vmatprep.subr.bf16.mxu0 %v434_v61  ;;  %v58_v61 = vld [vmem:[%s57_s22] sm:$0x1]  ;;  %v514_v63 = vpack.c.bf16 %v186_v60, %v182_v59  ;;  %v516_v2 = vpack.c.bf16 %v185_v1, %v181_v0 }
  0x56   :  { %497 = vmatpush1.bf16.msra.mxu1 %v496_v25  ;;  %v54_v7 = vld [vmem:[%s698_s4] sm:$0xf]  ;;  %s377_s4 = sshll.u32 %s613_s0, 4  ;;  %s378_s4 = int_to_ptr.vmem [resolvable:$true] %s377_s4 }
  0x57   :  { %499 = vmatprep.subr.bf16.mxu1 %v498_v27  ;;  %v199_v26 = vrot.slane %v54_v7, %v198_v22  ;;  %s579_s25 = scalar_lea.vmem %s378_s4, 16  ;;  %s583_s26 = scalar_lea.vmem %s378_s4, 32 }
  0x58   :  { %437 = vmatpush1.bf16.msra.mxu0 %v436_v8  ;;  %v194_v8 = vsub.s32 1, %v189_v4  ;;  %p580_p2 = scmp.ne.s32.totalorder %s378_s4, %s579_s25  ;;  %p584_p3 = scmp.lt.s32.totalorder %s378_s4, %s378_s4 }
  0x59   :  { %439 = vmatprep.subr.bf16.mxu0 %v438_v9  ;;  %v191_v9 = vrot.slane %v54_v7, %v190_v6  ;;  %p585_p4 = scmp.lt.s32.totalorder %s583_s26, %s579_s25 }
  0x5a   :  { %501 = vmatpush1.bf16.msra.mxu1 %v500_v37  ;;  %v195_v11 = vrot.slane %v54_v7, %v194_v8 }
  0x5b   :  { %503 = vmatprep.subr.bf16.mxu1 %v502_v39  ;;  %p586_p5 = por %p585_p4, %p584_p3 }
  0x5c   :  { %441 = vmatpush1.bf16.msra.mxu0 %v440_v20 }
  0x5d   :  { %443 = vmatprep.subr.bf16.mxu0 %v442_v21  ;;  %v202_v21 = vsub.s32 3, %v189_v4  ;;  %p587_p6 = pnand %p586_p5, %p580_p2 }
  0x5e   :  { %505 = vmatpush1.bf16.msra.mxu1 %v504_v48 }
  0x5f   :  { %507 = vmatprep.subr.bf16.mxu1 %v506_v49  ;;  %v203_v23 = vrot.slane %v54_v7, %v202_v21 }
  0x60   :  { %445 = vmatpush1.bf16.msra.mxu0 %v444_v32 }
  0x61   :  { %447 = vmatprep.subr.bf16.mxu0 %v446_v33 }
  0x62   :  { %509 = vmatpush1.bf16.msra.mxu1 %v508_v55 }
  0x63   :  { %511 = vmatprep.subr.bf16.mxu1 %v510_v56 }
  0x64   :  { %449 = vmatpush1.bf16.msra.mxu0 %v448_v44 }
  0x65   :  { %451 = vmatprep.subr.bf16.mxu0 %v450_v45 }
  0x66   :  { %513 = vmatpush1.bf16.msra.mxu1 %v512_v62 }
  0x67   :  { %515 = vmatprep.subr.bf16.mxu1 %v514_v63 }
  0x68   :  { %453 = vmatpush1.bf16.msra.mxu0 %v452_v54 }
  0x6a   :  { %517 = vmatpush1.bf16.msra.mxu1 %v516_v2 }
  0x6b   :  { %273 = vmatmul.mubr.f32.vlgmr.msra.gmra.mrb[0].mxu0 %v58_v61 }
  0x6d   :  { %344 = vmatmul.mubr.f32.vlgmr.msra.gmra.mrb[0].mxu1 %v58_v61 }
 0x13e   :  { %v274_v10 = vpop.f32.mrb[0].mxu0 }
 0x13f   :  { %v275_v12 = vadd.f32 %v274_v10, %v191_v9  ;;  %v276_v13 = vpop.f32.mrb[1].mxu0 }
 0x140   :  { %v277_v15 = vadd.f32 %v276_v13, %v195_v11  ;;  %v345_v17 = vpop.f32.mrb[0].mxu1 }
 0x141   :  { %v388_v14 = vmul.f32 -1.442695, %v275_v12  ;;  %v347_v18 = vpop.f32.mrb[1].mxu1  ;;  %v346_v29 = vadd.f32 %v345_v17, %v199_v26 }
 0x142   :  { %v389_v16 = vmul.f32 -1.442695, %v277_v15  ;;  %v348_v27 = vadd.f32 %v347_v18, %v203_v23 }
 0x143   :  { %525 = vpow2.f32 %v388_v14 }
 0x144   :  { %527 = vpow2.f32 %v389_v16 }
 0x14d   :  { %v526_v19 = vpop.eup %525 }
 0x14e   :  { %v353_v20 = vadd.f32 1.0, %v526_v19  ;;  %v528_v24 = vpop.eup %527 }
 0x14f   :  { %v359_v25 = vadd.f32 1.0, %v528_v24 }
 0x150   :  { %529 = vrcp.f32 %v353_v20 }
 0x151   :  { %531 = vrcp.f32 %v359_v25 }
 0x15a   :  { %v530_v28 = vpop.eup %529 }
 0x15b   :  { %v362_v30 = vmul.f32 %v530_v28, %v348_v27  ;;  %v532_v32 = vpop.eup %531 }
 0x15c   :  { %v365_v33 = vsub.f32 1.0, %v532_v32  ;;  %v367_v36 = vmul.f32 %v532_v32, %v671_v5 }
 0x15d   :  { %v363_v31 = vadd.f32 %v362_v30, %v346_v29 }
 0x15f   :  { %533 = vtanh.f32 %v363_v31 }
 0x169   :  { %v534_v34 = vpop.eup %533 }
 0x16a   :  { %v366_v35 = vmul.f32 %v534_v34, %v365_v33 }
 0x16c   :  { %v368_v37 = vadd.f32 %v367_v36, %v366_v35 }
 0x16e   :  { %369 = vst [vmem:[#allocation10] sm:$0x1] %v368_v37  ;;  %370 = vst [vmem:[#allocation2] sm:$0x1] %v368_v37 }
 0x16f   :  { %590 = shalt.err (!%p587_p6)
}
 0x170   :  { %s591_s29 = scalar_lea.hbm %s699_s5, 16 }
 0x171   :  { %p592_p7 = scmp.ne.s32.totalorder %s699_s5, %s591_s29  ;;  %p595_p8 = scmp.lt.u32.totalorder %s591_s29, %s699_s5 }
 0x173   :  { %p597_p9 = pnand %p595_p8, %p592_p7 }
 0x175   :  { %600 = shalt.err (!%p597_p9)
}
 0x176   :  { %380 = dma.vmem_to_hbm [thread:$0]  %s378_s4, 16, %s699_s5, [#allocation7]  }
 0x177   :  { %605 = dma.done.wait [#allocation7], 16  }
 0x178   :  { %606 = vsyncadd [#allocation7], 4294967280 }
 0x179   :  { %384 = vsyncpa [#allocation6], 1 }
 0x17a   :  { %385 = vsyncpa [#allocation9], 1 }
 0x17b   :  { %386 = vsyncpa [#allocation7], 1 }

</bundles_post_ra>
